<compile_context>
chip_gen: v5e
topology: v5e:2x2
jax: 0.10.0
libtpu: 0.0.40
codegen_flags: <defaults>
</compile_context>

<pallas_src>
import functools

import jax
import jax.numpy as jnp
from jax import lax
from jax.experimental import pallas as pl
from jax.experimental.pallas import tpu as pltpu


def _round_up(v, m):
    return (v + m - 1) // m * m


def _vmem_capacity_bytes():
    try:
        info = pltpu.get_tpu_info()
        cap = int(getattr(info, "vmem_capacity_bytes", 0) or 0)
        if cap > 0:
            return cap
    except Exception:
        pass
    return 64 * 1024 * 1024  # conservative fallback (v7x physical VMEM)


def _build_selector(s, w, ow, owp):
    # One-hot selector Q of shape (s*w, s*s*owp):
    #   Q[i*w + q*s + j, (i*s + j)*owp + q] = 1   for q < ow
    # so that (xr_block @ Q)[ct*oh + a, p*owp + q] = x[ct, a*s+i, q*s+j],
    # with p = i*s + j.  0/1 entries are exact in bf16.
    k = s * w
    n = s * s * owp
    row = lax.broadcasted_iota(jnp.int32, (k, n), 0)
    col = lax.broadcasted_iota(jnp.int32, (k, n), 1)
    p = col // owp
    q = col - p * owp
    i = p // s
    j = p - i * s
    hit = (q < ow) & (row == i * w + q * s + j)
    return hit.astype(jnp.bfloat16)


def _pixel_unshuffle_kernel(q_ref, x_ref, o_ref, *,
                            s, c_tile, oh, ow, owp, n_split, batch_store):
    # q_ref: (s*w, s*s*owp)      bf16 one-hot selector (resident, constant block)
    # x_ref: (c_tile*oh, s*w)    input rows for this channel tile
    # o_ref: (c_tile, s*s*oh, ow) output block (reshaped to (c, s*s, oh, ow) outside)
    x = x_ref[...]
    q = q_ref[...]
    dims = (((1,), (0,)), ((), ()))

    if n_split == 1:
        # bf16 inputs: single exact bf16 x bf16 -> f32 MXU pass.
        z = lax.dot_general(x.astype(jnp.bfloat16), q, dims,
                            preferred_element_type=jnp.float32)
    else:
        # Exact bf16 split (bf16_3x style): 0/1 selector makes every pass exact.
        rem = x.astype(jnp.float32)
        z = jnp.zeros((x.shape[0], q.shape[1]), jnp.float32)
        for _ in range(n_split):
            part = rem.astype(jnp.bfloat16)
            rem = rem - part.astype(jnp.float32)
            z = z + lax.dot_general(part, q, dims,
                                    preferred_element_type=jnp.float32)

    z = z.astype(o_ref.dtype)  # cast once; reused by every phase store below

    for p in range(s * s):
        blk = z[:, p * owp:p * owp + ow]          # (c_tile*oh, ow), aligned start
        if batch_store:
            # Free (layout-preserving) reshape since oh % 8 == 0.
            o_ref[:, p * oh:(p + 1) * oh, :] = blk.reshape(c_tile, oh, ow)
        else:
            for ct in range(c_tile):
                o_ref[ct, p * oh:(p + 1) * oh, :] = blk[ct * oh:(ct + 1) * oh, :]


def _footprint_bytes(c_tile, *, oh, ow, owp, s, w, itemsize, n_split):
    in_blk = c_tile * oh * s * w * itemsize
    out_blk = c_tile * s * s * oh * ow * itemsize
    q_blk = (s * w) * (s * s * owp) * 2                  # bf16 selector
    pipeline = 2 * (in_blk + out_blk + q_blk)            # double-buffered blocks
    acc = c_tile * oh * (s * s * owp) * 4                # f32 accumulator
    zc = c_tile * oh * (s * s * owp) * itemsize          # cast result
    split = c_tile * oh * s * w * (4 + 4 + 2) if n_split > 1 else 0  # rem/x_f32/part
    return pipeline + acc + zc + split


def _choose_c_tile(b, c, *, oh, ow, owp, s, w, itemsize, n_split, budget):
    divisors = [d for d in range(1, c + 1) if c % d == 0]
    fits = [d for d in divisors
            if _footprint_bytes(d, oh=oh, ow=ow, owp=owp, s=s, w=w,
                                itemsize=itemsize, n_split=n_split) <= budget]
    if not fits:
        return 1
    # Input block second-minor dim is c_tile*oh: keep it 8-aligned (or full).
    aligned = [d for d in fits if d == c or (d * oh) % 8 == 0]
    cands = aligned if aligned else fits
    # Prefer >=2 parallel grid units so v7x's two TensorCores both get work.
    multi = [d for d in cands if b * (c // d) >= 2]
    pool = multi if multi else cands
    return max(pool)


def pixel_unshuffle(x, down_scale):
    """Pallas TPU implementation of the PyTorch PixelUnShuffle.forward."""
    if not isinstance(down_scale, int):
        raise ValueError("Down scale factor must be a integer number")
    b, c, h, w = x.shape
    assert h % down_scale == 0
    assert w % down_scale == 0
    s = down_scale
    if s == 1:
        return x  # identity permutation
    oh, ow = h // s, w // s
    oc = c * s * s

    # Lane padding of each phase group: align to 128 when inflation <= 2x.
    if ow % 128 == 0:
        owp = ow
    elif ow >= 64:
        owp = _round_up(ow, 128)
    else:
        owp = ow

    if x.dtype == jnp.bfloat16:
        n_split = 1          # single exact bf16 MXU pass
    elif x.dtype == jnp.float16:
        n_split = 2          # 2 x 8 mantissa bits cover f16's 11
    else:
        n_split = 3          # covers f32's 24-bit mantissa (bf16_3x)
        # TODO(synk): integer inputs with |x| >= 2^24 lose precision through the
        # f32/bf16 MXU selection path; an all-dtype-exact variant needs a
        # non-matmul lane scatter.

    cap = _vmem_capacity_bytes()
    vmem_limit = min((cap * 3) // 4, 96 * 1024 * 1024)   # big on v5e/v6e, safe on v7x
    budget = (vmem_limit * 7) // 10
    itemsize = int(jnp.dtype(x.dtype).itemsize)
    c_tile = _choose_c_tile(b, c, oh=oh, ow=ow, owp=owp, s=s, w=w,
                            itemsize=itemsize, n_split=n_split, budget=budget)
    batch_store = (oh % 8) == 0

    # Free row-major reshape: xr[b, ct*oh + a, i*w + m] == x[b, ct, a*s + i, m].
    xr = x.reshape(b, c * oh, s * w)
    q2 = _build_selector(s, w, ow, owp)
    # TODO(synk): for very wide images (s*w >~ 4096) the selector is quadratic
    # in w; a W-tiled (block-diagonal selector) variant would bound its size.

    kernel = functools.partial(
        _pixel_unshuffle_kernel,
        s=s, c_tile=c_tile, oh=oh, ow=ow, owp=owp,
        n_split=n_split, batch_store=batch_store)

    out = pl.pallas_call(
        kernel,
        out_shape=jax.ShapeDtypeStruct((b, c, s * s * oh, ow), x.dtype),
        grid=(b, c // c_tile),
        in_specs=[
            # Selector: constant block -> DMA'd once, stays resident in VMEM.
            pl.BlockSpec((s * w, s * s * owp), lambda bi, ci: (0, 0)),
            pl.BlockSpec((None, c_tile * oh, s * w), lambda bi, ci: (bi, ci, 0)),
        ],
        out_specs=pl.BlockSpec((None, c_tile, s * s * oh, ow),
                               lambda bi, ci: (bi, ci, 0, 0)),
        compiler_params=pltpu.CompilerParams(
            dimension_semantics=("parallel", "parallel"),
            vmem_limit_bytes=int(vmem_limit)),
    )(q2, xr)

    # Free reshape: (b, c, s*s*oh, ow) -> (b, c*s*s, oh, ow).
    return out.reshape(b, oc, oh, ow)


def _reference_pixel_unshuffle(x, down_scale):
    # Pure-JAX reference replicating the PyTorch reshape/permute exactly.
    b, c, h, w = x.shape
    s = down_scale
    oh, ow = h // s, w // s
    oc = c * s * s
    y = x.reshape(b, c, oh, s, ow, s)
    y = jnp.transpose(y, (0, 1, 3, 5, 2, 4))
    return y.reshape(b, oc, oh, ow)


if __name__ == "__main__":
    key = jax.random.PRNGKey(0)
    b, c, h, w = 2, 4, 16, 16
    down_scale = 2

    # float32 path (3 exact bf16 MXU passes).
    x = jax.random.normal(key, (b, c, h, w), dtype=jnp.float32)
    out = jax.block_until_ready(pixel_unshuffle(x, down_scale))
    ref = _reference_pixel_unshuffle(x, down_scale)
    assert out.shape == (b, c * down_scale * down_scale,
                         h // down_scale, w // down_scale)
    assert out.dtype == x.dtype
    assert jnp.allclose(out, ref, rtol=1e-5, atol=1e-5), "f32 mismatch vs reference"

    # bfloat16 path (single native bf16 MXU pass).
    x_bf16 = x.astype(jnp.bfloat16)
    out_bf16 = jax.block_until_ready(pixel_unshuffle(x_bf16, down_scale))
    ref_bf16 = _reference_pixel_unshuffle(x_bf16, down_scale)
    assert out_bf16.dtype == jnp.bfloat16
    assert jnp.allclose(out_bf16.astype(jnp.float32),
                        ref_bf16.astype(jnp.float32),
                        rtol=1e-2, atol=1e-2), "bf16 mismatch vs reference"

    print("KERNEL_OK")
</pallas_src>

<mosaic_0001>
module attributes {stable_mosaic.version = 11 : i64} {
  func.func @_pixel_unshuffle_kernel(%arg0: i32, %arg1: i32, %arg2: memref<32x32xbf16, #tpu.memory_space<vmem>>, %arg3: memref<1x32x32xf32, #tpu.memory_space<vmem>>, %arg4: memref<1x4x32x8xf32, #tpu.memory_space<vmem>>) attributes {dimension_semantics = [#tpu.dimension_semantics<parallel>, #tpu.dimension_semantics<parallel>], iteration_bounds = array<i64: 2, 1>, scalar_prefetch = 0 : i64, scratch_operands = 0 : i64, tpu.core_type = #tpu.core_type<tc>, window_params = [{pipeline_mode = #tpu.pipeline_mode<synchronous>, transform_indices = @transform_0, window_bounds = array<i64: 32, 32>}, {transform_indices = @transform_1, window_bounds = array<i64: 1, 32, 32>}, {transform_indices = @transform_2, window_bounds = array<i64: 1, 4, 32, 8>}]} {
    %c0 = arith.constant 0 : index
    %c0_0 = arith.constant 0 : index
    %c0_1 = arith.constant 0 : index
    %0 = vector.load %arg3[%c0, %c0_0, %c0_1] : memref<1x32x32xf32, #tpu.memory_space<vmem>>, vector<1x32x32xf32>
    %1 = vector.shape_cast %0 : vector<1x32x32xf32> to vector<32x32xf32>
    %c0_2 = arith.constant 0 : index
    %c0_3 = arith.constant 0 : index
    %2 = vector.load %arg2[%c0_2, %c0_3] : memref<32x32xbf16, #tpu.memory_space<vmem>>, vector<32x32xbf16>
    %cst = arith.constant 0.000000e+00 : f32
    %3 = vector.broadcast %cst : f32 to vector<32x32xf32>
    %4 = arith.truncf %1 : vector<32x32xf32> to vector<32x32xbf16>
    %5 = arith.extf %4 : vector<32x32xbf16> to vector<32x32xf32>
    %6 = arith.subf %1, %5 : vector<32x32xf32>
    %cst_4 = arith.constant dense<0.000000e+00> : vector<32x32xf32>
    %7 = tpu.matmul %4, %2, %cst_4 {dimension_numbers = #tpu.dot_dimension_numbers<[1], [0], [0], [1], [0, 0, 1, 1], [], []>} : vector<32x32xbf16>, vector<32x32xbf16>, vector<32x32xf32> -> vector<32x32xf32>
    %8 = arith.addf %3, %7 : vector<32x32xf32>
    %9 = arith.truncf %6 : vector<32x32xf32> to vector<32x32xbf16>
    %10 = arith.extf %9 : vector<32x32xbf16> to vector<32x32xf32>
    %11 = arith.subf %6, %10 : vector<32x32xf32>
    %cst_5 = arith.constant dense<0.000000e+00> : vector<32x32xf32>
    %12 = tpu.matmul %9, %2, %cst_5 {dimension_numbers = #tpu.dot_dimension_numbers<[1], [0], [0], [1], [0, 0, 1, 1], [], []>} : vector<32x32xbf16>, vector<32x32xbf16>, vector<32x32xf32> -> vector<32x32xf32>
    %13 = arith.addf %8, %12 : vector<32x32xf32>
    %14 = arith.truncf %11 : vector<32x32xf32> to vector<32x32xbf16>
    %cst_6 = arith.constant dense<0.000000e+00> : vector<32x32xf32>
    %15 = tpu.matmul %14, %2, %cst_6 {dimension_numbers = #tpu.dot_dimension_numbers<[1], [0], [0], [1], [0, 0, 1, 1], [], []>} : vector<32x32xbf16>, vector<32x32xbf16>, vector<32x32xf32> -> vector<32x32xf32>
    %16 = arith.addf %13, %15 : vector<32x32xf32>
    %17 = vector.extract_strided_slice %16 {offsets = [0, 0], sizes = [32, 8], strides = [1, 1]} : vector<32x32xf32> to vector<32x8xf32>
    %18 = vector.shape_cast %17 : vector<32x8xf32> to vector<4x8x8xf32>
    %c0_7 = arith.constant 0 : index
    %c0_8 = arith.constant 0 : index
    %c0_9 = arith.constant 0 : index
    %c0_10 = arith.constant 0 : index
    %19 = vector.load %arg4[%c0_7, %c0_8, %c0_9, %c0_10] : memref<1x4x32x8xf32, #tpu.memory_space<vmem>>, vector<1x4x8x8xf32>
    %20 = vector.shape_cast %19 : vector<1x4x8x8xf32> to vector<4x8x8xf32>
    %21 = vector.shape_cast %18 : vector<4x8x8xf32> to vector<1x4x8x8xf32>
    tpu.vector_store %arg4[%c0_7, %c0_8, %c0_9, %c0_10], %21 {strides = array<i32>} : memref<1x4x32x8xf32, #tpu.memory_space<vmem>>, vector<1x4x8x8xf32>,
    %22 = vector.extract_strided_slice %16 {offsets = [0, 8], sizes = [32, 8], strides = [1, 1]} : vector<32x32xf32> to vector<32x8xf32>
    %23 = vector.shape_cast %22 : vector<32x8xf32> to vector<4x8x8xf32>
    %c0_11 = arith.constant 0 : index
    %c0_12 = arith.constant 0 : index
    %c8 = arith.constant 8 : index
    %c0_13 = arith.constant 0 : index
    %24 = vector.load %arg4[%c0_11, %c0_12, %c8, %c0_13] : memref<1x4x32x8xf32, #tpu.memory_space<vmem>>, vector<1x4x8x8xf32>
    %25 = vector.shape_cast %24 : vector<1x4x8x8xf32> to vector<4x8x8xf32>
    %26 = vector.shape_cast %23 : vector<4x8x8xf32> to vector<1x4x8x8xf32>
    tpu.vector_store %arg4[%c0_11, %c0_12, %c8, %c0_13], %26 {strides = array<i32>} : memref<1x4x32x8xf32, #tpu.memory_space<vmem>>, vector<1x4x8x8xf32>,
    %27 = vector.extract_strided_slice %16 {offsets = [0, 16], sizes = [32, 8], strides = [1, 1]} : vector<32x32xf32> to vector<32x8xf32>
    %28 = vector.shape_cast %27 : vector<32x8xf32> to vector<4x8x8xf32>
    %c0_14 = arith.constant 0 : index
    %c0_15 = arith.constant 0 : index
    %c16 = arith.constant 16 : index
    %c0_16 = arith.constant 0 : index
    %29 = vector.load %arg4[%c0_14, %c0_15, %c16, %c0_16] : memref<1x4x32x8xf32, #tpu.memory_space<vmem>>, vector<1x4x8x8xf32>
    %30 = vector.shape_cast %29 : vector<1x4x8x8xf32> to vector<4x8x8xf32>
    %31 = vector.shape_cast %28 : vector<4x8x8xf32> to vector<1x4x8x8xf32>
    tpu.vector_store %arg4[%c0_14, %c0_15, %c16, %c0_16], %31 {strides = array<i32>} : memref<1x4x32x8xf32, #tpu.memory_space<vmem>>, vector<1x4x8x8xf32>,
    %32 = vector.extract_strided_slice %16 {offsets = [0, 24], sizes = [32, 8], strides = [1, 1]} : vector<32x32xf32> to vector<32x8xf32>
    %33 = vector.shape_cast %32 : vector<32x8xf32> to vector<4x8x8xf32>
    %c0_17 = arith.constant 0 : index
    %c0_18 = arith.constant 0 : index
    %c24 = arith.constant 24 : index
    %c0_19 = arith.constant 0 : index
    %34 = vector.load %arg4[%c0_17, %c0_18, %c24, %c0_19] : memref<1x4x32x8xf32, #tpu.memory_space<vmem>>, vector<1x4x8x8xf32>
    %35 = vector.shape_cast %34 : vector<1x4x8x8xf32> to vector<4x8x8xf32>
    %36 = vector.shape_cast %33 : vector<4x8x8xf32> to vector<1x4x8x8xf32>
    tpu.vector_store %arg4[%c0_17, %c0_18, %c24, %c0_19], %36 {strides = array<i32>} : memref<1x4x32x8xf32, #tpu.memory_space<vmem>>, vector<1x4x8x8xf32>,
    return
  }
  func.func @transform_0(%arg0: i32, %arg1: i32) -> (i32, i32) {
    %c0_i32 = arith.constant 0 : i32
    %c0_i32_0 = arith.constant 0 : i32
    %c0_i32_1 = arith.constant 0 : i32
    return %c0_i32, %c0_i32_0 : i32, i32
  }
  func.func @transform_1(%arg0: i32, %arg1: i32) -> (i32, i32, i32) {
    %c0_i32 = arith.constant 0 : i32
    %c0_i32_0 = arith.constant 0 : i32
    return %arg0, %arg1, %c0_i32 : i32, i32, i32
  }
  func.func @transform_2(%arg0: i32, %arg1: i32) -> (i32, i32, i32, i32) {
    %c0_i32 = arith.constant 0 : i32
    %c0_i32_0 = arith.constant 0 : i32
    %c0_i32_1 = arith.constant 0 : i32
    return %arg0, %arg1, %c0_i32, %c0_i32_0 : i32, i32, i32, i32
  }
}

</mosaic_0001>

<bundles_post_ra>
// kernel: tpu_custom_call.1
= control target key start
LH: loop header
LB: loop body
LE: loop exit
PB: predicated region body
PF: predicated region fallthrough
CT: control target
= control target key end

     0   :  { %7 = vsyncpa [#allocation3], 0  ;;  %s934_s0 = inlined_call_operand.hbm [shape: bf16[32,32], index: 0, kind: input, shape index: {}]   ;;  %s935_s1 = inlined_call_operand.hbm [shape: f32[2,32,32], index: 1, kind: input, shape index: {}]   ;;  %s936_s2 = inlined_call_operand.vmem [shape: f32[2,4,32,8], index: 2, kind: output, shape index: {}]  }
   0x1   :  { %8 = vsyncpa [#allocation5], 0 }
   0x2   :  { %10 = vsyncpa [#allocation5 + $0x1], 0  ;;  %s777_s9 = smov 0   ;;  %s779_s10 = smov 0  }
   0x3   :  { %s781_s11 = smov 0   ;;  %s783_s12 = smov 0  }
   0x4   :  { %s785_s13 = smov 0   ;;  %s787_s14 = smov 0  }
   0x5 LB: > { %s530_s15 = sadd.s32 4294967295, %s752_s14   ;;  %p71_p0 = scmp.ne.s32.totalorder %s736_s10, %s732_s9  ;;  %s752_s14 = sphi %s787_s14, %s16_s14   ;;  %s748_s13 = sphi %s785_s13, %s945_s13   ;;  %s744_s12 = sphi %s783_s12, %s944_s12   ;;  %s740_s11 = sphi %s781_s11, %s943_s11   ;;  %s736_s10 = sphi %s779_s10, %s942_s10   ;;  %s732_s9 = sphi %s777_s9, %s941_s9  }
   0x6   : > { %p807_p1 = scmp.eq.s32.totalorder %s530_s15, 0  ;;  %p532_p2 = scmp.ge.s32.totalorder %s752_s14, 1 }
   0x7   : > { %p110_p3 = scmp.lt.s32.totalorder %s752_s14, 3  ;;  %s121_s20 = sshll.u32 %s934_s0, 4  ;;  %s122_s20 = int_to_ptr.hbm [resolvable:$true] %s121_s20 }
   0x8   : > { %p815_p4 = por %p807_p1, %p71_p0  ;;  %s754_s22 = smov [#allocation2]  }
   0x9   : > { %p822_p5 = pnand %p532_p2, %p110_p3  ;;  %s123_s23 = sshll.u32 %s754_s22, 4  ;;  %s124_s23 = int_to_ptr.vmem [resolvable:$true] %s123_s23 }
   0xa   : > { %s755_s24 = smov 64   ;;  %s756_s25 = smov 4  }
   0xb   : > { %p571_p6 = pneg %p822_p5  ;;  %s28_s26 = sadd.s32 1, %s748_s13 }
   0xc   : > { %p30_p8 = scmp.ge.s32.totalorder %s28_s26, 2  ;;  %s58_s27 = sadd.s32 1, %s740_s11 }
   0xd   : > { %p572_p7 = pnand %p571_p6, %p807_p1  ;;  %p65_p9 = scmp.ne.s32.totalorder %s740_s11, %s736_s10 }
   0xe   : > { %p66_p10 = scmp.eq.s32.totalorder %s752_s14, 0  ;;  %s947_s26 = smov (%p30_p8, %s28_s26), 0 }
   0xf   : > { %574 = dma.hbm_to_vmem [thread:$0]  (!%p572_p7), %s122_s20, 256, %s124_s23, [#allocation3], %s755_s24, %s755_s24, %s756_s25  }
  0x10   : > { %p837_p11 = por %p66_p10, %p65_p9  ;;  %p580_p12 = scmp.lt.s32.totalorder %s752_s14, 2 }
  0x11   : > { %s53_s29 = ssub.s32 %s748_s13, %s947_s26  ;;  %s137_s30 = sand.u32 1, %s740_s11  }
  0x12   : > { %p56_p13 = scmp.eq.s32.totalorder %s53_s29, 0  ;;  %s535_s3 = sshll.u32 %s137_s30, 5 }
  0x13   : > { %s559_s4 = sshll.u32 %s748_s13, 5  ;;  %s141_s15 = scalar_lea.vmem [#allocation4], %s535_s3 }
  0x14   : > { %s847_s5 = scalar_select %p56_p13, %s740_s11, %s58_s27  }
  0x15   : > { %s148_s8 = scalar_lea.hbm %s935_s1, %s559_s4  ;;  %s151_s18 = sshll.u32 %s141_s15, 4  ;;  %s152_s18 = int_to_ptr.vmem [resolvable:$true] %s151_s18 }
  0x16   : > { %s149_s9 = sshll.u32 %s148_s8, 4  ;;  %p576_p0 = pnand %p580_p12, %p837_p11  ;;  %s150_s9 = int_to_ptr.hbm [resolvable:$true] %s149_s9 }
  0x17   : > { %s138_s19 = scalar_lea.sflag [#allocation5], %s137_s30  ;;  %s757_s20 = smov 128  }
  0x18   : > { %s758_s22 = smov 8   ;;  %163 = sbr.rel (%p822_p5) target bundleno = 341 (0x155), region = 28 }
  0x19   : > { %578 = dma.hbm_to_vmem [thread:$0]  (!%p576_p0), %s150_s9, 512, %s152_s18, %s138_s19, %s757_s20, %s757_s20, %s758_s22  }
  0x1d   : > { %723 = dma.done.wait (%p807_p1), [#allocation3], 256  }
  0x1e   : > { %725 = vsyncadd (%p807_p1), [#allocation3], 4294967040  ;;  %s170_s23 = sand.u32 1, %s736_s10  }
  0x1f   : > { %s540_s24 = sshll.u32 %s170_s23, 5  ;;  %s171_s25 = scalar_lea.sflag [#allocation5], %s170_s23 }
  0x20   : > { %s174_s27 = scalar_lea.vmem [#allocation4], %s540_s24 }
  0x21   : > { %727 = dma.done.wait (%p815_p4), %s171_s25, 512  }
  0x22   : > { %729 = vsyncadd (%p815_p4), %s171_s25, 4294966784  ;;  %v562_v0 = vld [vmem:[#allocation2 + $0x8] sm:$0xff]  ;;  %v214_v1 = vld [vmem:[%s174_s27] sm:$0xff]  ;;  %vm268_vm0 = vcmask 261120   ;;  %p203_p1 = scmp.lt.s32.totalorder %s744_s12, 1  ;;  %vm360_vm1 = vcmask 64512  }
  0x23   : > { %v215_v2 = vld [vmem:[%s174_s27 + $0x8] sm:$0xff]  ;;  %v222_v3 = vpack.c.bf16 %v214_v1, %v214_v1  ;;  %v216_v4 = vld [vmem:[%s174_s27 + $0x10] sm:$0xff]  ;;  %v217_v5 = vld [vmem:[%s174_s27 + $0x18] sm:$0xff]  ;;  %316 = vmatpush.bf16.msra.mxu1 %v562_v0  ;;  %281 = vmatpush.bf16.msra.mxu0 %v562_v0  ;;  %s759_s29 = smov 112   ;;  %s760_s30 = smov 120  }
  0x24   : > { %v561_v6 = vld [vmem:[#allocation2] sm:$0xff]  ;;  %v223_v7 = vpack.c.bf16 %v215_v2, %v215_v2  ;;  %v224_v8 = vpack.c.bf16 %v216_v4, %v216_v4  ;;  %v225_v9 = vpack.c.bf16 %v217_v5, %v217_v5  ;;  %343 = vmatpush.bf16.msra.mxu2 %v562_v0  ;;  %563 = vmatpush.bf16.msra.mxu3 %v562_v0  ;;  %s949_s12 = smov (!%p203_p1, %s744_s12), 1 }
  0x25   : > { %v226_v10 = vunpack.c.l.bf16 %v222_v3  ;;  %v298_v11 = vunpack.c.l.b16 %v222_v3  ;;  %s560_s16 = sshll.u32 %s949_s12, 7  ;;  %s761_s12 = smov 104  }
  0x26   : > { %v227_v12 = vunpack.c.l.bf16 %v223_v7  ;;  %v299_v13 = vunpack.c.l.b16 %v223_v7  ;;  %v228_v14 = vunpack.c.l.bf16 %v224_v8  ;;  %v229_v15 = vunpack.c.l.bf16 %v225_v9  ;;  %s878_s28 = scalar_lea.vmem %s936_s2, %s560_s16 }
  0x27   : > { %v230_v16 = vsub.f32 %v214_v1, %v226_v10  ;;  %317 = vmatpush.bf16.msra.mxu1 %v561_v6  ;;  %282 = vmatpush.bf16.msra.mxu0 %v561_v6  ;;  %v300_v36 = vunpack.c.l.b16 %v224_v8  ;;  %v301_v37 = vunpack.c.l.b16 %v225_v9 }
  0x28   : > { %v302_v17 = vpack.c.b16 %v299_v13, %v298_v11  ;;  %v231_v18 = vsub.f32 %v215_v2, %v227_v12  ;;  %v232_v19 = vsub.f32 %v216_v4, %v228_v14  ;;  %344 = vmatpush.bf16.msra.mxu2 %v561_v6  ;;  %564 = vmatpush.bf16.msra.mxu3 %v561_v6 }
  0x29   : > { %v234_v20 = vpack.c.bf16 %v230_v16, %v230_v16  ;;  %v233_v21 = vsub.f32 %v217_v5, %v229_v15  ;;  %v303_v40 = vpack.c.b16 %v301_v37, %v300_v36 }
  0x2a   : > { %v235_v22 = vpack.c.bf16 %v231_v18, %v231_v18  ;;  %v236_v23 = vpack.c.bf16 %v232_v19, %v232_v19  ;;  %553 = vmatmul.msk.bf16.vlgmr.msra.gmra.mxu1 %vm268_vm0, %v302_v17 }
  0x2b   : > { %v250_v24 = vunpack.c.l.b16 %v234_v20  ;;  %v238_v25 = vunpack.c.l.bf16 %v234_v20  ;;  %v237_v26 = vpack.c.bf16 %v233_v21, %v233_v21 }
  0x2c   : > { %v251_v27 = vunpack.c.l.b16 %v235_v22  ;;  %v239_v28 = vunpack.c.l.bf16 %v235_v22  ;;  %v252_v29 = vunpack.c.l.b16 %v236_v23  ;;  %v240_v38 = vunpack.c.l.bf16 %v236_v23 }
  0x2d   : > { %v242_v30 = vsub.f32 %v230_v16, %v238_v25  ;;  %v253_v31 = vunpack.c.l.b16 %v237_v26  ;;  %v241_v39 = vunpack.c.l.bf16 %v237_v26 }
  0x2e   : > { %v254_v32 = vpack.c.b16 %v251_v27, %v250_v24  ;;  %v243_v33 = vsub.f32 %v231_v18, %v239_v28  ;;  %v244_v41 = vsub.f32 %v232_v19, %v240_v38 }
  0x2f   : > { %v255_v34 = vpack.c.b16 %v253_v31, %v252_v29  ;;  %v245_v42 = vsub.f32 %v233_v21, %v241_v39 }
  0x30   : > { %551 = vmatmul.msk.bf16.vlgmr.msra.gmra.mxu0 %vm268_vm0, %v254_v32  ;;  %v329_v35 = vpack.c.bf16 %v243_v33, %v242_v30 }
  0x31   : > { %552 = vmatmul.msk.bf16.vlgmr.msra.gmra.mxu3 %vm268_vm0, %v255_v34  ;;  %v330_v43 = vpack.c.bf16 %v245_v42, %v244_v41 }
  0x32   : > { %555 = vmatmul.msk.bf16.vlgmr.msra.gmra.mxu2 %vm268_vm0, %v329_v35 }
  0x3a   : > { %554 = vmatmul.msk.bf16.gmra.mxu1 %vm268_vm0, %v303_v40 }
  0x42   : > { %556 = vmatmul.msk.bf16.gmra.mxu2 %vm268_vm0, %v330_v43 }
  0xa7   : > { %v319_v44 = vpop.f32.mrf.mxu1 }
  0xad   : > { %v284_v45 = vpop.f32.mrf.mxu0 }
  0xae   : > { %v320_v46 = vadd.f32 %v319_v44, %v284_v45 }
  0xaf   : > { %v321_v47 = vpop.f32.mrf.mxu1 }
  0xb4   : > { %v289_v54 = vpop.f32.mrf.mxu3 }
  0xb5   : > { %v346_v48 = vpop.f32.mrf.mxu2  ;;  %v286_v50 = vpop.f32.mrf.mxu0 }
  0xb6   : > { %v356_v49 = vadd.f32 %v346_v48, %v320_v46  ;;  %v322_v51 = vadd.f32 %v321_v47, %v286_v50 }
  0xb7   : > { %v324_v55 = vpop.f32.mrf.mxu1 }
  0xb8   : > { %361 = vst.msk [vmem:[%s878_s28] sm:$0xff] %vm360_vm1, %v356_v49  ;;  %385 = vrot.lane.b32.xlu2 %v356_v49, %s759_s29  ;;  %369 = vrot.lane.b32.xlu0 %v356_v49, %s760_s30  ;;  %v325_v56 = vadd.f32 %v324_v55, %v289_v54 }
  0xbc   : > { %v291_v59 = vpop.f32.mrf.mxu3 }
  0xbd   : > { %v348_v52 = vpop.f32.mrf.mxu2 }
  0xbe   : > { %v357_v53 = vadd.f32 %v348_v52, %v322_v51 }
  0xbf   : > { %v326_v60 = vpop.f32.mrf.mxu1 }
  0xc0   : > { %362 = vst.msk [vmem:[%s878_s28 + $0x20] sm:$0xff] %vm360_vm1, %v357_v53  ;;  %401 = vrot.lane.b32.xlu2 %v356_v49, %s761_s12  ;;  %371 = vrot.lane.b32.xlu0 %v357_v53, %s760_s30  ;;  %v327_v61 = vadd.f32 %v326_v60, %v291_v59 }
  0xc5   : > { %v351_v57 = vpop.f32.mrf.mxu2 }
  0xc6   : > { %v358_v58 = vadd.f32 %v351_v57, %v325_v56 }
  0xc8   : > { %363 = vst.msk [vmem:[%s878_s28 + $0x40] sm:$0xff] %vm360_vm1, %v358_v58  ;;  %387 = vrot.lane.b32.xlu2 %v357_v53, %s759_s29  ;;  %389 = vrot.lane.b32.xlu0 %v358_v58, %s759_s29 }
  0xc9   : > { %373 = vrot.lane.b32.xlu1 %v358_v58, %s760_s30 }
  0xcd   : > { %v353_v62 = vpop.f32.mrf.mxu2 }
  0xce   : > { %v359_v63 = vadd.f32 %v353_v62, %v327_v61 }
  0xd0   : > { %364 = vst.msk [vmem:[%s878_s28 + $0x60] sm:$0xff] %vm360_vm1, %v359_v63  ;;  %403 = vrot.lane.b32.xlu0 %v357_v53, %s761_s12  ;;  %407 = vrot.lane.b32.xlu2 %v359_v63, %s761_s12 }
  0xd1   : > { %375 = vrot.lane.b32.xlu1 %v359_v63, %s760_s30 }
  0xd9   : > { %391 = vrot.lane.b32.xlu1 %v359_v63, %s759_s29 }
  0xe1   : > { %405 = vrot.lane.b32.xlu1 %v358_v58, %s761_s12 }
 0x112   : > { %v386_v0 = vpop.permute.xlu2 %385 }
 0x113   : > { %397 = vst.msk [vmem:[%s878_s28 + $0x10] sm:$0xff] %vm360_vm1, %v386_v0 }
 0x11a   : > { %v402_v1 = vpop.permute.xlu2 %401 }
 0x11b   : > { %413 = vst.msk [vmem:[%s878_s28 + $0x18] sm:$0xff] %vm360_vm1, %v402_v1 }
 0x122   : > { %v388_v2 = vpop.permute.xlu2 %387 }
 0x123   : > { %398 = vst.msk [vmem:[%s878_s28 + $0x30] sm:$0xff] %vm360_vm1, %v388_v2 }
 0x12a   : > { %v370_v3 = vpop.permute.xlu0 %369  ;;  %v408_v4 = vpop.permute.xlu2 %407 }
 0x12b   : > { %381 = vst.msk [vmem:[%s878_s28 + $0x8] sm:$0xff] %vm360_vm1, %v370_v3 }
 0x12c   : > { %416 = vst.msk [vmem:[%s878_s28 + $0x78] sm:$0xff] %vm360_vm1, %v408_v4 }
 0x132   : > { %v372_v5 = vpop.permute.xlu0 %371 }
 0x133   : > { %382 = vst.msk [vmem:[%s878_s28 + $0x28] sm:$0xff] %vm360_vm1, %v372_v5 }
 0x13a   : > { %v390_v6 = vpop.permute.xlu0 %389 }
 0x13b   : > { %399 = vst.msk [vmem:[%s878_s28 + $0x50] sm:$0xff] %vm360_vm1, %v390_v6  ;;  %v374_v7 = vpop.permute.xlu1 %373 }
 0x13c   : > { %383 = vst.msk [vmem:[%s878_s28 + $0x48] sm:$0xff] %vm360_vm1, %v374_v7 }
 0x142   : > { %v404_v8 = vpop.permute.xlu0 %403 }
 0x143   : > { %414 = vst.msk [vmem:[%s878_s28 + $0x38] sm:$0xff] %vm360_vm1, %v404_v8  ;;  %v376_v9 = vpop.permute.xlu1 %375 }
 0x144   : > { %384 = vst.msk [vmem:[%s878_s28 + $0x68] sm:$0xff] %vm360_vm1, %v376_v9 }
 0x14b   : > { %v392_v10 = vpop.permute.xlu1 %391 }
 0x14c   : > { %400 = vst.msk [vmem:[%s878_s28 + $0x70] sm:$0xff] %vm360_vm1, %v392_v10 }
 0x153   : > { %v406_v11 = vpop.permute.xlu1 %405 }
 0x154   : > { %415 = vst.msk [vmem:[%s878_s28 + $0x58] sm:$0xff] %vm360_vm1, %v406_v11 }
 0x155 PF: > { %s16_s14 = sadd.s32 1, %s752_s14   ;;  %s941_s9 = smov %s736_s10 }
 0x156   : > { %p13_p2 = scmp.ge.s32.totalorder %s16_s14, 4   ;;  %s942_s10 = smov %s740_s11 }
 0x157   : > { %s943_s11 = smov %s847_s5  ;;  %s944_s12 = smov %s748_s13 }
 0x158   : > { %s945_s13 = smov %s947_s26  ;;  %15 = sbr.rel (!%p13_p2) target bundleno = 5 (0x5), region = 73 }
 0x15d   :  { %449 = vsyncpa [#allocation3], 1 }
 0x15e   :  { %451 = vsyncpa [#allocation3 + $0x1], 1 }
 0x15f   :  { %452 = vsyncpa [#allocation5], 1 }
 0x160   :  { %454 = vsyncpa [#allocation5 + $0x1], 1 }

</bundles_post_ra>
